<compile_context>
chip_gen: v7x
topology: tpu7x:2x2x1
jax: 0.10.0
libtpu: 0.0.40
codegen_flags: <defaults>
</compile_context>

<pallas_src>
import jax
import jax.numpy as jnp
from jax import lax
from jax.experimental import pallas as pl
from jax.experimental.pallas import tpu as pltpu


def _conv1o1_kernel(x_ref, w_ref, o_ref):
    # x_ref: (C, T)  channel-major slab of one batch element (T = HW tile, lane dim)
    # w_ref: (O, C)  pre-normalized 1x1 weight, resident across the whole grid
    # o_ref: (O, T)  output slab (lane-dense)
    x = x_ref[...]                                            # (C, T) native dtype

    # MXU first: y[o, t] = sum_c wn[o, c] * x[c, t], f32 accumulation.
    y = jnp.dot(w_ref[...], x.astype(w_ref.dtype),
                preferred_element_type=jnp.float32)           # (O, T) f32

    # Per-pixel (per-column) L2 norm over channels, f32 on the VPU; rsqrt on the EUP.
    xf = x.astype(jnp.float32)
    ssq = jnp.sum(xf * xf, axis=0, keepdims=True)             # (1, T)
    # zeros -> rsqrt(0 + 1) = 1, so all-zero pixels stay zero (matches xnorm + (xnorm==0))
    inv = lax.rsqrt(ssq + (ssq == 0.0).astype(jnp.float32))

    # Column scaling commutes with the contraction over C:  y * inv == wn @ (x * inv).
    o_ref[...] = (y * inv).astype(o_ref.dtype)


def _vmem_capacity_bytes():
    """Physical VMEM per TensorCore (v5e/v6e: 128 MiB, v7x: 64 MiB); conservative fallback."""
    try:
        info = pltpu.get_tpu_info()
        cap = getattr(info, "vmem_capacity_bytes", None)
        if cap:
            return int(cap)
    except Exception:
        pass
    return 64 * 1024 * 1024


def conv1o1_forward(x_nchw, weight_oc11, *, tile_hw=2048,
                    mxu_dtype=jnp.bfloat16, out_dtype=None,
                    vmem_budget_bytes=None):
    """x_nchw: (N, C, H, W); weight_oc11: (O, C, 1, 1) -> (N, O, H, W) in out_dtype."""
    N, C, H, W = x_nchw.shape
    O = weight_oc11.shape[0]
    assert weight_oc11.shape == (O, C, 1, 1)
    out_dtype = x_nchw.dtype if out_dtype is None else out_dtype

    hw = H * W
    # Free reshape NCHW -> (N, C, HW); keep the activation in its native dtype in HBM.
    x = x_nchw.reshape(N, C, hw)

    # One-time weight normalization hoisted out of the kernel (sqrt+divide matches reference).
    w = weight_oc11.reshape(O, C).astype(jnp.float32)
    wnorm = jnp.sqrt(jnp.sum(w * w, axis=1, keepdims=True))
    wn = (w / wnorm).astype(mxu_dtype)                        # (O, C) MXU-ready, no transpose

    x_bytes = jnp.dtype(x.dtype).itemsize
    o_bytes = jnp.dtype(out_dtype).itemsize
    m_bytes = jnp.dtype(mxu_dtype).itemsize
    w_bytes = O * C * m_bytes

    # --- generation-aware VMEM budget ---
    vmem_phys = _vmem_capacity_bytes()
    vmem_limit = int(min(vmem_phys * 3 // 4, 100 * 1024 * 1024))   # 48 MiB v7x, 96-100 MiB v5e/v6e
    budget = int(vmem_budget_bytes) if vmem_budget_bytes is not None else (vmem_limit * 3) // 4

    def footprint(t):
        # double-buffered x / out slabs + (conservatively double-counted) resident weight
        # + in-kernel temporaries: f32 upcast of x, MXU-dtype operand, f32 matmul result.
        return (2 * C * t * x_bytes + 2 * O * t * o_bytes + 2 * w_bytes
                + C * t * 4 + C * t * m_bytes + O * t * 4)

    # Lane-dense tile: whole HW if it fits one block, otherwise a multiple of 128.
    if hw <= tile_hw:
        tile = hw
    else:
        tile = max(128, (tile_hw // 128) * 128)
    while tile > 128 and footprint(tile) > budget:
        tile = max(128, ((tile // 2) // 128) * 128)

    # Ensure >= 2 grid programs so both v7x TensorCores get work on small-batch shapes.
    if N * pl.cdiv(hw, tile) < 2 and hw >= 256:
        tile = max(128, ((pl.cdiv(hw, 2) + 127) // 128) * 128)

    num_tiles = pl.cdiv(hw, tile)        # ragged tail (hw % tile != 0) is masked by Pallas
    grid = (N, num_tiles)

    cost = pl.CostEstimate(
        flops=2 * N * hw * C * O,
        transcendentals=N * hw,
        bytes_accessed=N * hw * (C * x_bytes + O * o_bytes) + w_bytes,
    )

    out = pl.pallas_call(
        _conv1o1_kernel,
        out_shape=jax.ShapeDtypeStruct((N, O, hw), out_dtype),
        grid_spec=pltpu.PrefetchScalarGridSpec(
            num_scalar_prefetch=0,
            grid=grid,
            in_specs=[
                # batch dim squeezed; kernel sees (C, tile)
                pl.BlockSpec((None, C, tile), lambda n, j: (n, 0, j)),
                # full pre-normalized weight; constant index map -> resident, never re-fetched
                pl.BlockSpec((O, C), lambda n, j: (0, 0)),
            ],
            out_specs=pl.BlockSpec((None, O, tile), lambda n, j: (n, 0, j)),
        ),
        compiler_params=pltpu.CompilerParams(
            dimension_semantics=("parallel", "parallel"),
            vmem_limit_bytes=vmem_limit,
        ),
        cost_estimate=cost,
    )(x, wn)

    # TODO(synk): the PyTorch module prints 'isnan conv1o1' on NaNs; a host-side print of a
    # data-dependent condition has no clean in-kernel equivalent and is skipped.
    return out.reshape(N, O, H, W)


def _reference(x_nchw, weight_oc11):
    xnorm = jnp.sqrt(jnp.sum(x_nchw * x_nchw, axis=1, keepdims=True))
    xnorm = xnorm + (xnorm == 0.0).astype(jnp.float32)
    xn = x_nchw / xnorm
    w = weight_oc11
    wnorm = jnp.sqrt(jnp.sum(w * w, axis=1, keepdims=True))
    wn = w / wnorm
    return jnp.einsum("nchw,oc->nohw", xn, wn[:, :, 0, 0],
                      precision=lax.Precision.HIGHEST)


if __name__ == "__main__":
    key = jax.random.PRNGKey(0)
    kx, kw = jax.random.split(key)

    N, C, H, W = 2, 4, 16, 16
    O = 8
    x = jax.random.normal(kx, (N, C, H, W), dtype=jnp.float32)
    # force a few zero-norm pixels to exercise the zero-norm branch
    x = x.at[:, :, 0, 0].set(0.0)
    weight = jax.random.normal(kw, (O, C, 1, 1), dtype=jnp.float32)

    ref = _reference(x, weight)

    # default path: bf16 MXU operands, f32 norm math / accumulation, f32 output
    out = jax.block_until_ready(conv1o1_forward(x, weight))
    assert out.shape == (N, O, H, W)
    assert out.dtype == jnp.float32
    # tolerance covers bf16 MXU-operand rounding; structure (norms, contraction) is exact
    assert jnp.allclose(out, ref, atol=2e-2, rtol=2e-2), "bf16-MXU path mismatch vs reference"
    # zero-norm pixels must come out exactly zero (matches the xnorm + (xnorm==0) trick)
    assert jnp.all(out[:, :, 0, 0] == 0.0), "zero-norm pixel not exactly zero"

    # f32 MXU-operand path (no bf16 operand cast); checked with the same relaxed tolerance
    # to stay robust across MXU f32-pass implementations on different generations.
    out_f32 = jax.block_until_ready(conv1o1_forward(x, weight, mxu_dtype=jnp.float32))
    assert out_f32.shape == (N, O, H, W)
    assert jnp.allclose(out_f32, ref, atol=2e-2, rtol=2e-2), "f32 path mismatch vs reference"

    print("KERNEL_OK")
</pallas_src>

<mosaic_0001>
module attributes {stable_mosaic.version = 11 : i64} {
  func.func @_conv1o1_kernel(%arg0: i32, %arg1: i32, %arg2: memref<1x4x256xf32, #tpu.memory_space<vmem>>, %arg3: memref<8x4xbf16, #tpu.memory_space<vmem>>, %arg4: memref<1x8x256xf32, #tpu.memory_space<vmem>>) attributes {dimension_semantics = [#tpu.dimension_semantics<parallel>, #tpu.dimension_semantics<parallel>], iteration_bounds = array<i64: 2, 1>, scalar_prefetch = 0 : i64, scratch_operands = 0 : i64, tpu.core_type = #tpu.core_type<tc>, window_params = [{transform_indices = @transform_0, window_bounds = array<i64: 1, 4, 256>}, {pipeline_mode = #tpu.pipeline_mode<synchronous>, transform_indices = @transform_1, window_bounds = array<i64: 8, 4>}, {transform_indices = @transform_2, window_bounds = array<i64: 1, 8, 256>}]} {
    %c0 = arith.constant 0 : index
    %c0_0 = arith.constant 0 : index
    %c0_1 = arith.constant 0 : index
    %0 = vector.load %arg2[%c0, %c0_0, %c0_1] : memref<1x4x256xf32, #tpu.memory_space<vmem>>, vector<1x4x256xf32>
    %1 = vector.shape_cast %0 : vector<1x4x256xf32> to vector<4x256xf32>
    %c0_2 = arith.constant 0 : index
    %c0_3 = arith.constant 0 : index
    %2 = vector.load %arg3[%c0_2, %c0_3] : memref<8x4xbf16, #tpu.memory_space<vmem>>, vector<8x4xbf16>
    %3 = arith.truncf %1 : vector<4x256xf32> to vector<4x256xbf16>
    %cst = arith.constant dense<0.000000e+00> : vector<8x256xf32>
    %4 = tpu.matmul %2, %3, %cst {dimension_numbers = #tpu.dot_dimension_numbers<[1], [0], [0], [1], [0, 0, 1, 1], [], []>} : vector<8x4xbf16>, vector<4x256xbf16>, vector<8x256xf32> -> vector<8x256xf32>
    %5 = arith.mulf %1, %1 : vector<4x256xf32>
    %cst_4 = arith.constant dense<0.000000e+00> : vector<256xf32>
    %6 = vector.multi_reduction <add>, %5, %cst_4 [0] : vector<4x256xf32> to vector<256xf32>
    %7 = vector.shape_cast %6 : vector<256xf32> to vector<1x256xf32>
    %cst_5 = arith.constant 0.000000e+00 : f32
    %8 = vector.broadcast %cst_5 : f32 to vector<1x256xf32>
    %9 = arith.cmpf oeq, %7, %8 : vector<1x256xf32>
    %10 = arith.extui %9 : vector<1x256xi1> to vector<1x256xi32>
    %11 = arith.sitofp %10 : vector<1x256xi32> to vector<1x256xf32>
    %12 = arith.addf %7, %11 : vector<1x256xf32>
    %13 = math.rsqrt %12 : vector<1x256xf32>
    %14 = vector.broadcast %13 : vector<1x256xf32> to vector<8x256xf32>
    %15 = arith.mulf %4, %14 : vector<8x256xf32>
    %c0_6 = arith.constant 0 : index
    %c0_7 = arith.constant 0 : index
    %c0_8 = arith.constant 0 : index
    %16 = vector.load %arg4[%c0_6, %c0_7, %c0_8] : memref<1x8x256xf32, #tpu.memory_space<vmem>>, vector<1x8x256xf32>
    %17 = vector.shape_cast %16 : vector<1x8x256xf32> to vector<8x256xf32>
    %18 = vector.shape_cast %15 : vector<8x256xf32> to vector<1x8x256xf32>
    tpu.vector_store %arg4[%c0_6, %c0_7, %c0_8], %18 {strides = array<i32>} : memref<1x8x256xf32, #tpu.memory_space<vmem>>, vector<1x8x256xf32>,
    return
  }
  func.func @transform_0(%arg0: i32, %arg1: i32) -> (i32, i32, i32) {
    %c0_i32 = arith.constant 0 : i32
    %c0_i32_0 = arith.constant 0 : i32
    return %arg0, %c0_i32, %arg1 : i32, i32, i32
  }
  func.func @transform_1(%arg0: i32, %arg1: i32) -> (i32, i32) {
    %c0_i32 = arith.constant 0 : i32
    %c0_i32_0 = arith.constant 0 : i32
    %c0_i32_1 = arith.constant 0 : i32
    return %c0_i32, %c0_i32_0 : i32, i32
  }
  func.func @transform_2(%arg0: i32, %arg1: i32) -> (i32, i32, i32) {
    %c0_i32 = arith.constant 0 : i32
    %c0_i32_0 = arith.constant 0 : i32
    return %arg0, %c0_i32, %arg1 : i32, i32, i32
  }
}

</mosaic_0001>

<bundles_post_ra>
// kernel: tpu_custom_call.1
= control target key start
LH: loop header
LB: loop body
LE: loop exit
PB: predicated region body
PF: predicated region fallthrough
CT: control target
= control target key end

     0   :  { %7 = vsyncpa [#allocation3], 0  ;;  %s773_s0 = inlined_call_operand.hbm [shape: f32[2,4,256], index: 0, kind: input, shape index: {}]   ;;  %s774_s1 = inlined_call_operand.vmem [shape: bf16[8,4], index: 1, kind: input, shape index: {}]   ;;  %s775_s2 = inlined_call_operand.hbm [shape: f32[2,8,256], index: 2, kind: output, shape index: {}]  }
   0x1   :  { %9 = vsyncpa [#allocation3 + $0x1], 0 }
   0x2   :  { %10 = vsyncpa [#allocation4], 0 }
   0x3   :  { %12 = vsyncpa [#allocation4 + $0x1], 0  ;;  %s597_s9 = smov 0   ;;  %s599_s10 = smov 0  }
   0x4   :  { %s601_s11 = smov 0   ;;  %s603_s12 = smov 0  }
   0x5   :  { %s605_s13 = smov 0   ;;  %s607_s14 = smov 0  }
   0x6 LB: > { %s374_s15 = sadd.s32 4294967295, %s576_s14   ;;  %s375_s16 = sadd.s32 4294967294, %s576_s14   ;;  %s576_s14 = sphi %s607_s14, %s18_s14   ;;  %s572_s13 = sphi %s605_s13, %s791_s13   ;;  %s568_s12 = sphi %s603_s12, %s790_s12   ;;  %s564_s11 = sphi %s601_s11, %s789_s11   ;;  %s560_s10 = sphi %s599_s10, %s788_s10   ;;  %s556_s9 = sphi %s597_s9, %s787_s9  }
   0x7   : > { %s30_s17 = sadd.s32 1, %s572_s13  ;;  %s39_s18 = sadd.s32 1, %s564_s11 }
   0x8   : > { %p32_p0 = scmp.ge.s32.totalorder %s30_s17, 2  ;;  %p46_p1 = scmp.ne.s32.totalorder %s564_s11, %s560_s10 }
   0x9   : > { %p47_p2 = scmp.eq.s32.totalorder %s576_s14, 0  ;;  %p52_p3 = scmp.ne.s32.totalorder %s560_s10, %s556_s9 }
   0xa   : > { %s793_s17 = smov (%p32_p0, %s30_s17), 0  ;;  %p53_p5 = scmp.eq.s32.totalorder %s374_s15, 0 }
   0xb   : > { %p638_p4 = por %p47_p2, %p46_p1  ;;  %s34_s20 = ssub.s32 %s572_s13, %s793_s17 }
   0xc   : > { %p99_p6 = scmp.eq.s32.totalorder %s374_s15, 1  ;;  %p37_p7 = scmp.eq.s32.totalorder %s34_s20, 0 }
   0xd   : > { %p644_p8 = por %p53_p5, %p52_p3  ;;  %p105_p10 = scmp.eq.s32.totalorder %s375_s16, 1 }
   0xe   : > { %p648_p9 = por %p99_p6, %p46_p1  ;;  %p407_p13 = scmp.lt.s32.totalorder %s576_s14, 2 }
   0xf   : > { %s653_s23 = scalar_select %p37_p7, %s564_s11, %s39_s18  }
  0x10   : > { %s779_s22 = scalar_select %p648_p9, 1, 0 }
  0x11   : > { %p655_p11 = por %p105_p10, %p52_p3  ;;  %s128_s25 = sand.u32 1, %s564_s11  }
  0x12   : > { %s378_s26 = sshll.u32 %s128_s25, 3  ;;  %s393_s27 = sshll.u32 %s572_s13, 7 }
  0x13   : > { %s780_s24 = scalar_select %p655_p11, 1, 0 }
  0x14   : > { %s666_s30 = scalar_lea.hbm %s773_s0, %s393_s27  ;;  %s132_s3 = scalar_lea.vmem [#allocation2], %s378_s26 }
  0x15   : > { %s142_s4 = sshll.u32 %s132_s3, 4  ;;  %p672_p0 = pnand %p407_p13, %p638_p4  ;;  %s668_s4 = int_to_ptr.vmem [resolvable:$true] %s142_s4 }
  0x16   : > { %s129_s6 = scalar_lea.sflag [#allocation3], %s128_s25  ;;  %s464_s7 = scalar_lea.hbm %s666_s30, 128 }
  0x17   : > { %p465_p3 = scmp.ne.s32.totalorder %s666_s30, %s464_s7  ;;  %p466_p5 = pneg %p672_p0 }
  0x18   : > { %s469_s16 = scalar_lea.hbm %s773_s0, 256  ;;  %p470_p4 = scmp.lt.u32.totalorder %s666_s30, %s773_s0 }
  0x19   : > { %p467_p6 = pnand %p466_p5, %p465_p3  ;;  %p471_p10 = scmp.lt.u32.totalorder %s469_s16, %s464_s7 }
  0x1a   : > { %p473_p12 = scmp.lt.u32.totalorder %s464_s7, %s666_s30 }
  0x1b   : > { %p468_p7 = pneg %p467_p6  ;;  %p472_p13 = por %p471_p10, %p470_p4 }
  0x1d   : > { %p474_p1 = por %p473_p12, %p472_p13 }
  0x1f   : > { %p475_p2 = pnand %p474_p1, %p468_p7 }
  0x21   : > { %478 = shalt.err (!%p475_p2)
}
  0x22   : > { %s479_s20 = scalar_lea.vmem %s668_s4, 128  ;;  %s578_s25 = smov [#allocation2]  }
  0x23   : > { %p480_p3 = scmp.ne.s32.totalorder %s668_s4, %s479_s20  ;;  %s484_s26 = sshll.u32 %s578_s25, 4  ;;  %s485_s26 = int_to_ptr.vmem [resolvable:$false] %s484_s26 }
  0x24   : > { %s486_s27 = scalar_lea.vmem %s485_s26, 256  ;;  %p487_p9 = scmp.lt.s32.totalorder %s668_s4, %s485_s26 }
  0x25   : > { %p482_p6 = pnand %p480_p3, %p466_p5  ;;  %p488_p4 = scmp.lt.s32.totalorder %s486_s27, %s479_s20 }
  0x27   : > { %p483_p11 = pneg %p482_p6  ;;  %p489_p10 = por %p488_p4, %p487_p9 }
  0x29   : > { %p490_p12 = pnand %p489_p10, %p483_p11 }
  0x2b   : > { %493 = shalt.err (!%p490_p12)
}
  0x2c   : > { %402 = dma.hbm_to_vmem [thread:$0]  (!%p672_p0), %s666_s30, 128, %s668_s4, %s129_s6  }
  0x2d   : > { %p782_p1 = scmp.lt.s32.totalorder %s576_s14, 3  ;;  %p783_p2 = scmp.ge.s32.totalorder %s576_s14, 1 }
  0x2f   : > { %p148_p5 = pnand %p783_p2, %p782_p1 }
  0x30   : > { %s708_s28 = sand.u32 (!%p148_p5), 1, %s560_s10  }
  0x31   : > { %151 = sbr.rel (%p148_p5) target bundleno = 295 (0x127), region = 28  ;;  %s382_s29 = sshll.u32 (!%p148_p5), %s708_s28, 3 }
  0x32   : > { %s154_s3 = scalar_lea.sflag (!%p148_p5), [#allocation3], %s708_s28  ;;  %s157_s7 = scalar_lea.vmem (!%p148_p5), [#allocation2], %s382_s29 }
  0x38   : > { %547 = dma.done.wait (%p644_p8), %s154_s3, 128  }
  0x39   : > { %549 = vsyncadd (%p644_p8), %s154_s3, 4294967168  ;;  %v579_v0 = vmov 0   ;;  %v181_v1 = vld [vmem:[%s157_s7] sm:$0xff]  ;;  %vm192_vm0 = vcmask 1041408   ;;  %vm188_vm1 = vcmask 31744   ;;  %vm244_vm2 = vcmask 1043456  }
  0x3a   : > { %231 = vmatprep.mubr.bf16.mxu0 %v579_v0  ;;  %v184_v2 = vcombine.high %v181_v1, %v181_v1  ;;  %v186_v3 = vpack.c.bf16 %v181_v1, %v181_v1  ;;  %v182_v6 = vld [vmem:[%s774_s1] sm:$0xf]  ;;  %v240_v7 = vmul.f32 %v181_v1, %v181_v1  ;;  %v580_v23 = vmov 0.0   ;;  %s383_s21 = sshll.u32 %s708_s28, 4  ;;  %s394_s5 = sshll.u32 %s568_s12, 8 }
  0x3b   : > { %s177_s6 = scalar_lea.vmem [#allocation5], %s383_s21  ;;  %s724_s18 = scalar_lea.hbm %s775_s2, %s394_s5 }
  0x3c   : > { %v187_v4 = vpack.c.bf16 %v184_v2, %v184_v2  ;;  %v194_v5 = vsel %vm192_vm0, %v186_v3, 0  ;;  %v242_v8 = vcombine.high %v240_v7, %v240_v7  ;;  %v245_v9 = vsel %vm244_vm2, %v240_v7, 0.0  ;;  %s290_s8 = sshll.u32 %s177_s6, 4  ;;  %s274_s12 = scalar_lea.sflag [#allocation4], %s708_s28  ;;  %s726_s8 = int_to_ptr.vmem [resolvable:$true] %s290_s8 }
  0x3d   : > { %v246_v11 = vrot.slane %v245_v9, 4  ;;  %s494_s19 = scalar_lea.vmem %s726_s8, 256  ;;  %p784_p9 = scmp.ne.s32.totalorder %s779_s22, 0 }
  0x3e   : > { %384 = vmatprep.subr.msk.bf16.mxu0 %vm192_vm0, %v187_v4  ;;  %v252_v10 = vsel %vm244_vm2, %v242_v8, 0.0  ;;  %p495_p8 = scmp.ne.s32.totalorder %s726_s8, %s494_s19  ;;  %s581_s20 = smov [#allocation5]  }
  0x3f   : > { %200 = vmatpush1.bf16.msra.mxu0 %v194_v5  ;;  %v253_v12 = vrot.slane %v252_v10, 4  ;;  %v247_v13 = vadd.f32 %v246_v11, %v245_v9  ;;  %s498_s25 = sshll.u32 %s581_s20, 4  ;;  %s499_s25 = int_to_ptr.vmem [resolvable:$false] %s498_s25 }
  0x40   : > { %p496_p11 = pnand %p495_p8, %p784_p9  ;;  %s500_s26 = scalar_lea.vmem %s499_s25, 512 }
  0x41   : > { %v254_v14 = vadd.f32 %v253_v12, %v252_v10  ;;  %v248_v15 = vrot.slane %v247_v13, 2  ;;  %p501_p7 = scmp.lt.s32.totalorder %s726_s8, %s499_s25  ;;  %p502_p13 = scmp.lt.s32.totalorder %s500_s26, %s494_s19 }
  0x42   : > { %385 = vmatmul.mubr.msk.bf16.vlgmr.msra.gmra.mrb[0].mxu0 %vm188_vm1, %v182_v6  ;;  %p497_p0 = pneg %p496_p11 }
  0x43   : > { %v255_v16 = vrot.slane %v254_v14, 2  ;;  %v249_v17 = vadd.f32 %v248_v15, %v247_v13  ;;  %p503_p3 = por %p502_p13, %p501_p7 }
  0x45   : > { %v256_v18 = vadd.f32 %v255_v16, %v254_v14  ;;  %v250_v19 = vrot.slane %v249_v17, 1  ;;  %p504_p6 = pnand %p503_p3, %p497_p0 }
  0x47   : > { %v257_v20 = vrot.slane %v256_v18, 1  ;;  %v251_v21 = vadd.f32 %v250_v19, %v249_v17 }
  0x49   : > { %v258_v22 = vadd.f32 %v257_v20, %v256_v18  ;;  %vm259_vm3 = vcmp.eq.f32.partialorder %v251_v21, 0.0 }
  0x4a   : > { %v386_v24 = vsel %vm259_vm3, 1.0, %v580_v23 }
  0x4b   : > { %vm260_vm4 = vcmp.eq.f32.partialorder %v258_v22, 0.0  ;;  %v265_v26 = vadd.f32 %v386_v24, %v251_v21 }
  0x4c   : > { %v387_v25 = vsel %vm260_vm4, 1.0, %v580_v23 }
  0x4d   : > { %v266_v27 = vadd.f32 %v387_v25, %v258_v22  ;;  %460 = vrsqrt.f32 %v265_v26 }
  0x4f   : > { %462 = vrsqrt.f32 %v266_v27 }
  0x57   : > { %v461_v28 = vpop.eup %460 }
  0x59   : > { %v463_v29 = vpop.eup %462 }
 0x115   : > { %v233_v30 = vpop.f32.mrb[0].mxu0 }
 0x116   : > { %v269_v31 = vmul.f32 %v461_v28, %v233_v30  ;;  %v235_v32 = vpop.f32.mrb[1].mxu0 }
 0x117   : > { %v270_v33 = vmul.f32 %v463_v29, %v235_v32  ;;  %v237_v34 = vpop.f32.mrb[2].mxu0 }
 0x118   : > { %271 = vst [vmem:[%s177_s6] sm:$0xff] %v269_v31  ;;  %v238_v35 = vpop.f32.mrb[3].mxu0 }
 0x119   : > { %272 = vst [vmem:[%s177_s6 + $0x8] sm:$0xff] %v270_v33 }
 0x11a   : > { %507 = shalt.err (!%p504_p6)
}
 0x11b   : > { %s508_s27 = scalar_lea.hbm %s724_s18, 256  ;;  %s512_s3 = scalar_lea.hbm %s775_s2, 512 }
 0x11c   : > { %p509_p4 = scmp.ne.s32.totalorder %s724_s18, %s508_s27  ;;  %p513_p1 = scmp.lt.u32.totalorder %s724_s18, %s775_s2 }
 0x11d   : > { %p514_p2 = scmp.lt.u32.totalorder %s512_s3, %s508_s27  ;;  %p516_p8 = scmp.lt.u32.totalorder %s508_s27, %s724_s18 }
 0x11e   : > { %p510_p10 = pnand %p509_p4, %p784_p9 }
 0x11f   : > { %p515_p5 = por %p514_p2, %p513_p1 }
 0x120   : > { %p511_p12 = pneg %p510_p10 }
 0x121   : > { %p517_p11 = por %p516_p8, %p515_p5 }
 0x123   : > { %p518_p0 = pnand %p517_p11, %p511_p12 }
 0x125   : > { %521 = shalt.err (!%p518_p0)
}
 0x126   : > { %397 = dma.vmem_to_hbm [thread:$0]  (%p784_p9), %s726_s8, 256, %s724_s18, %s274_s12  }
 0x127 PF: > { %s302_s4 = sand.u32 1, %s556_s9   ;;  %p785_p7 = scmp.ne.s32.totalorder %s780_s24, 0 }
 0x128   : > { %p786_p13 = scmp.ge.s32.totalorder %s576_s14, 2  ;;  %s303_s21 = scalar_lea.sflag [#allocation4], %s302_s4 }
 0x12a   : > { %p404_p3 = pnand %p786_p13, %p785_p7 }
 0x12c   : > { %551 = dma.done.wait (!%p404_p3), %s303_s21, 256  }
 0x12d   : > { %553 = vsyncadd (!%p404_p3), %s303_s21, 4294967040  ;;  %s18_s14 = sadd.s32 1, %s576_s14   ;;  %s787_s9 = smov %s560_s10 }
 0x12e   : > { %p15_p6 = scmp.ge.s32.totalorder %s18_s14, 4   ;;  %s788_s10 = smov %s564_s11 }
 0x12f   : > { %s789_s11 = smov %s653_s23  ;;  %s790_s12 = smov %s572_s13 }
 0x130   : > { %s791_s13 = smov %s793_s17  ;;  %17 = sbr.rel (!%p15_p6) target bundleno = 6 (0x6), region = 73 }
 0x137   :  { %308 = vsyncpa [#allocation3], 1 }
 0x138   :  { %310 = vsyncpa [#allocation3 + $0x1], 1 }
 0x139   :  { %311 = vsyncpa [#allocation4], 1 }
 0x13a   :  { %313 = vsyncpa [#allocation4 + $0x1], 1 }

</bundles_post_ra>
